<compile_context>
chip_gen: v5e
topology: v5e:2x2
jax: 0.10.0
libtpu: 0.0.40
codegen_flags: <defaults>
</compile_context>

<pallas_src>
import numpy as np
import jax
import jax.numpy as jnp
from jax.experimental import pallas as pl
from jax.experimental.pallas import tpu as pltpu


# ----------------------------------------------------------------------------
# Pallas kernel: block-Toeplitz contraction, MXU matmul per channel tile.
#   x_ref : (TD, TB, Tm)     compute dtype (bf16 by default)
#   k_ref : (1, TD, Tm, Ts)  block-Toeplitz diagonal tile, compute dtype
#   o_ref : (TD, TB, Ts)     output dtype (= input dtype)
#   acc   : (TD, TB, Ts)     f32 VMEM accumulator, resident across the m axis
# grid = (dim/TD, B/TB, n/Ts, n/Tm), m (reduction) axis last + "arbitrary".
# ----------------------------------------------------------------------------
def _tno_kernel(x_ref, k_ref, o_ref, acc_ref):
    j = pl.program_id(3)

    @pl.when(j == 0)
    def _init():
        acc_ref[...] = jnp.zeros_like(acc_ref)

    x = x_ref[...]        # (TD, TB, Tm)
    k = k_ref[0]          # (TD, Tm, Ts)
    # Per-channel MXU matmul (batched over the TD channel tile), f32 accumulate.
    acc_ref[...] += jnp.einsum(
        "dbm,dms->dbs", x, k, preferred_element_type=jnp.float32)

    @pl.when(j == pl.num_programs(3) - 1)
    def _finalize():
        o_ref[...] = acc_ref[...].astype(o_ref.dtype)


# ----------------------------------------------------------------------------
# Tile selection: lane-aligned sequence tiles, batch tile, and the largest
# channel tile (divisor of dim) that fits an explicit VMEM budget.
# ----------------------------------------------------------------------------
def _choose_tiles(n, dim, batch, compute_bytes, out_bytes,
                  vmem_budget=16 * 2**20):
    seq_t = 256 if n >= 512 else 128          # lane-dense, MXU-friendly
    n_pad = -(-n // seq_t) * seq_t

    if batch > 128:
        bt = 128
        b_pad = -(-batch // bt) * bt
    else:
        bt = batch
        b_pad = batch

    def footprint(td):
        k_b = td * seq_t * seq_t * compute_bytes
        x_b = td * bt * seq_t * compute_bytes
        o_b = td * bt * seq_t * out_bytes
        acc = td * bt * seq_t * 4
        # double-buffered inputs/outputs + resident accumulator
        return 2 * (k_b + x_b + o_b) + acc

    td = 1
    for cand in range(1, dim + 1):
        if dim % cand == 0 and footprint(cand) <= vmem_budget:
            td = cand
    return seq_t, n_pad, bt, b_pad, td, footprint(td)


# ----------------------------------------------------------------------------
# Parameter init (deterministic, mirrors nn.Parameter shapes in __init__).
# ----------------------------------------------------------------------------
def init_params(key, dim, num_freqs):
    k1, k2 = jax.random.split(key)
    return dict(
        coeffs_re=jax.random.normal(k1, (dim, num_freqs), jnp.float32),
        coeffs_im=jax.random.normal(k2, (dim, num_freqs), jnp.float32),
        dc=jnp.ones((dim, 1), jnp.float32),
    )


# ----------------------------------------------------------------------------
# torch.nn.functional.interpolate(mode='linear', align_corners=False) replica.
# ----------------------------------------------------------------------------
def _interp_linear(c, out_size, scale_factor):
    in_size = c.shape[-1]
    dst = jnp.arange(out_size, dtype=jnp.float32)
    src = (dst + 0.5) / scale_factor - 0.5
    src = jnp.clip(src, 0.0, float(in_size - 1))
    lo = jnp.floor(src).astype(jnp.int32)
    hi = jnp.minimum(lo + 1, in_size - 1)
    w = src - lo.astype(jnp.float32)
    return c[..., lo] * (1.0 - w) + c[..., hi] * w


# ----------------------------------------------------------------------------
# Forward pass: frequency-response + irfft setup in XLA glue, the O(n^2*dim)
# Toeplitz contraction in Pallas.
# ----------------------------------------------------------------------------
def tno_fd_norpe_forward(params, x, num_freqs, causal=False,
                         compute_dtype=jnp.bfloat16,
                         vmem_budget_bytes=16 * 2**20):
    if causal:
        # TODO(synk): causal branch requires `causal_spectrum` (Hilbert
        # transform of the real spectrum), not defined in the reference source.
        raise NotImplementedError("causal=True branch not implemented")

    orig_dtype = x.dtype
    lead = x.shape[:-2]
    n, dim = x.shape[-2], x.shape[-1]
    B = int(np.prod(lead)) if lead else 1
    fft_size = int(2 ** np.ceil(np.log2(2 * n)))
    time_factor = 2 * num_freqs
    sf = fft_size / time_factor
    half = fft_size // 2

    # --- frequency response -> time-domain per-channel kernel (glue) ---------
    pos_r = _interp_linear(params["coeffs_re"], half, sf)            # (dim, half)
    pos_i = _interp_linear(params["coeffs_im"], half, sf)
    pos_i = pos_i.at[:, -1].set(0.0)                                  # zero Nyquist imag
    a = jnp.concatenate(
        [params["dc"].astype(jnp.complex64), jax.lax.complex(pos_r, pos_i)],
        axis=1)                                                       # (dim, half+1)
    t = jnp.fft.irfft(a, n=fft_size, axis=1).astype(jnp.float32)      # (dim, fft_size)

    # --- tiling ---------------------------------------------------------------
    cbytes = jnp.dtype(compute_dtype).itemsize
    obytes = jnp.dtype(orig_dtype).itemsize
    T, n_pad, TB, B_pad, TD, fp = _choose_tiles(
        n, dim, B, cbytes, obytes, vmem_budget_bytes)
    n_blk = n_pad // T
    n_diag = 2 * n_blk - 1

    # --- block-Toeplitz diagonal tiles (compact: O(2*n*T*dim), not O(n^2*dim))
    # kt[diag, d, mm, ss] = t[d, (s - m) mod fft_size],
    #   s = si*T + ss, m = mi*T + mm, diag = si - mi + (n_blk - 1)
    diag = jnp.arange(n_diag, dtype=jnp.int32)
    mm = jnp.arange(T, dtype=jnp.int32)
    ss = jnp.arange(T, dtype=jnp.int32)
    rel = ((diag[:, None, None] - (n_blk - 1)) * T
           + (ss[None, None, :] - mm[None, :, None]))                 # (n_diag, T, T)
    idx = jnp.mod(rel, fft_size)
    kt = t.astype(compute_dtype)[:, idx]                              # (dim, n_diag, T, T)
    kt = jnp.transpose(kt, (1, 0, 2, 3))                              # (n_diag, dim, T, T)

    # --- x: (lead.., n, dim) -> (dim, B_pad, n_pad), sequence axis on lanes ---
    xk = x.reshape(B, n, dim)
    xk = jnp.transpose(xk, (2, 0, 1))                                 # (dim, B, n)
    xk = jnp.pad(xk, ((0, 0), (0, B_pad - B), (0, n_pad - n)))
    xk = xk.astype(compute_dtype)

    vmem_limit = int(min(96 * 2**20, max(32 * 2**20, 2 * fp + (2 << 20))))
    grid = (dim // TD, B_pad // TB, n_blk, n_blk)

    out = pl.pallas_call(
        _tno_kernel,
        out_shape=jax.ShapeDtypeStruct((dim, B_pad, n_pad), orig_dtype),
        grid_spec=pltpu.PrefetchScalarGridSpec(
            num_scalar_prefetch=0,
            grid=grid,
            in_specs=[
                # x block: channel tile d, batch tile b, m-tile j on lanes
                pl.BlockSpec((TD, TB, T), lambda d, b, i, j: (d, b, j)),
                # K block: diagonal (i - j), channel tile d
                pl.BlockSpec((1, TD, T, T),
                             lambda d, b, i, j: (i - j + n_blk - 1, d, 0, 0)),
            ],
            out_specs=pl.BlockSpec((TD, TB, T), lambda d, b, i, j: (d, b, i)),
            scratch_shapes=[pltpu.VMEM((TD, TB, T), jnp.float32)],
        ),
        compiler_params=pltpu.CompilerParams(
            dimension_semantics=("parallel", "parallel", "parallel", "arbitrary"),
            vmem_limit_bytes=vmem_limit,
        ),
    )(xk, kt)

    out = out[:, :B, :n]                                              # drop padding
    out = jnp.transpose(out, (1, 2, 0))                               # (B, n, dim)
    return out.reshape(*lead, n, dim)


# ----------------------------------------------------------------------------
# Pure-JAX reference (mirrors the PyTorch FFT path) for validation.
# ----------------------------------------------------------------------------
def reference_forward(params, x, num_freqs):
    n = x.shape[-2]
    fft_size = int(2 ** np.ceil(np.log2(2 * n)))
    sf = fft_size / (2 * num_freqs)
    half = fft_size // 2
    pos_r = _interp_linear(params["coeffs_re"], half, sf)
    pos_i = _interp_linear(params["coeffs_im"], half, sf).at[:, -1].set(0.0)
    a = jnp.concatenate(
        [params["dc"].astype(jnp.complex64), jax.lax.complex(pos_r, pos_i)],
        axis=1)
    a = jnp.transpose(a)[None]                                        # (1, F, dim)
    xf = jnp.fft.rfft(x.astype(jnp.float32), n=fft_size, axis=-2)
    y = jnp.fft.irfft(xf * a, n=fft_size, axis=-2)
    return y[..., :n, :]


if __name__ == "__main__":
    root = jax.random.PRNGKey(0)
    k1, k2, k3, k4 = jax.random.split(root, 4)

    # Config A: tiny problem (single s/m tile), f32 compute path.
    b, h, n, dim, num_freqs = 2, 2, 8, 16, 4
    params_a = init_params(k1, dim, num_freqs)
    x_a = jax.random.normal(k2, (b, h, n, dim), jnp.float32)
    out_a = jax.block_until_ready(
        tno_fd_norpe_forward(params_a, x_a, num_freqs,
                             compute_dtype=jnp.float32))
    ref_a = reference_forward(params_a, x_a, num_freqs)
    assert out_a.shape == x_a.shape and out_a.dtype == x_a.dtype
    np.testing.assert_allclose(np.asarray(out_a), np.asarray(ref_a),
                               rtol=2e-2, atol=2e-2)

    # Config B: multi-tile (block-Toeplitz diagonals + m-reduction across grid
    # steps), bf16 compute with f32 accumulation.
    b2, h2, n2, dim2, nf2 = 2, 2, 256, 16, 32
    params_b = init_params(k3, dim2, nf2)
    x_b = jax.random.normal(k4, (b2, h2, n2, dim2), jnp.float32)
    out_b = jax.block_until_ready(
        tno_fd_norpe_forward(params_b, x_b, nf2,
                             compute_dtype=jnp.bfloat16))
    ref_b = reference_forward(params_b, x_b, nf2)
    assert out_b.shape == x_b.shape and out_b.dtype == x_b.dtype
    np.testing.assert_allclose(np.asarray(out_b), np.asarray(ref_b),
                               rtol=5e-2, atol=5e-2)

    print("KERNEL_OK")
</pallas_src>

<mosaic_0001>
module attributes {stable_mosaic.version = 11 : i64} {
  func.func @_tno_kernel(%arg0: i32, %arg1: i32, %arg2: i32, %arg3: i32, %arg4: memref<16x4x128xf32, #tpu.memory_space<vmem>>, %arg5: memref<1x16x128x128xf32, #tpu.memory_space<vmem>>, %arg6: memref<16x4x128xf32, #tpu.memory_space<vmem>>, %arg7: memref<16x4x128xf32, #tpu.memory_space<vmem>>) attributes {dimension_semantics = [#tpu.dimension_semantics<parallel>, #tpu.dimension_semantics<parallel>, #tpu.dimension_semantics<parallel>, #tpu.dimension_semantics<arbitrary>], iteration_bounds = array<i64: 1, 1, 1, 1>, scalar_prefetch = 0 : i64, scratch_operands = 1 : i64, tpu.core_type = #tpu.core_type<tc>, window_params = [{transform_indices = @transform_0, window_bounds = array<i64: 16, 4, 128>}, {transform_indices = @transform_1, window_bounds = array<i64: 1, 16, 128, 128>}, {transform_indices = @transform_2, window_bounds = array<i64: 16, 4, 128>}]} {
    %c0_i32 = arith.constant 0 : i32
    %0 = arith.cmpi eq, %arg3, %c0_i32 : i32
    %1 = arith.extui %0 : i1 to i32
    %c0_i32_0 = arith.constant 0 : i32
    %2 = arith.cmpi ne, %1, %c0_i32_0 : i32
    scf.if %2 {
      %cst_15 = arith.constant 0.000000e+00 : f32
      %13 = vector.broadcast %cst_15 : f32 to vector<16x4x128xf32>
      %c0_16 = arith.constant 0 : index
      %c0_17 = arith.constant 0 : index
      %c0_18 = arith.constant 0 : index
      %14 = vector.load %arg7[%c0_16, %c0_17, %c0_18] : memref<16x4x128xf32, #tpu.memory_space<vmem>>, vector<16x4x128xf32>
      tpu.vector_store %arg7[%c0_16, %c0_17, %c0_18], %13 {strides = array<i32>} : memref<16x4x128xf32, #tpu.memory_space<vmem>>, vector<16x4x128xf32>,
    } else {
    }
    %c0 = arith.constant 0 : index
    %c0_1 = arith.constant 0 : index
    %c0_2 = arith.constant 0 : index
    %3 = vector.load %arg4[%c0, %c0_1, %c0_2] : memref<16x4x128xf32, #tpu.memory_space<vmem>>, vector<16x4x128xf32>
    %c0_3 = arith.constant 0 : index
    %c0_4 = arith.constant 0 : index
    %c0_5 = arith.constant 0 : index
    %c0_6 = arith.constant 0 : index
    %4 = vector.load %arg5[%c0_3, %c0_4, %c0_5, %c0_6] : memref<1x16x128x128xf32, #tpu.memory_space<vmem>>, vector<1x16x128x128xf32>
    %5 = vector.shape_cast %4 : vector<1x16x128x128xf32> to vector<16x128x128xf32>
    %c0_7 = arith.constant 0 : index
    %c0_8 = arith.constant 0 : index
    %c0_9 = arith.constant 0 : index
    %6 = vector.load %arg7[%c0_7, %c0_8, %c0_9] : memref<16x4x128xf32, #tpu.memory_space<vmem>>, vector<16x4x128xf32>
    "tpu.trace_start"() <{level = 10 : i32, message = "dbm,dms->dbs"}> : () -> ()
    %cst = arith.constant dense<0.000000e+00> : vector<16x4x128xf32>
    %7 = tpu.matmul %3, %5, %cst {dimension_numbers = #tpu.dot_dimension_numbers<[2], [1], [1], [2], [0, 0, 0, 1, 1, 2], [0], [0]>} : vector<16x4x128xf32>, vector<16x128x128xf32>, vector<16x4x128xf32> -> vector<16x4x128xf32>
    "tpu.trace_stop"() : () -> ()
    %8 = arith.addf %6, %7 : vector<16x4x128xf32>
    %c0_10 = arith.constant 0 : index
    %c0_11 = arith.constant 0 : index
    %c0_12 = arith.constant 0 : index
    %9 = vector.load %arg7[%c0_10, %c0_11, %c0_12] : memref<16x4x128xf32, #tpu.memory_space<vmem>>, vector<16x4x128xf32>
    tpu.vector_store %arg7[%c0_10, %c0_11, %c0_12], %8 {strides = array<i32>} : memref<16x4x128xf32, #tpu.memory_space<vmem>>, vector<16x4x128xf32>,
    %c0_i32_13 = arith.constant 0 : i32
    %10 = arith.cmpi eq, %arg3, %c0_i32_13 : i32
    %11 = arith.extui %10 : i1 to i32
    %c0_i32_14 = arith.constant 0 : i32
    %12 = arith.cmpi ne, %11, %c0_i32_14 : i32
    scf.if %12 {
      %c0_15 = arith.constant 0 : index
      %c0_16 = arith.constant 0 : index
      %c0_17 = arith.constant 0 : index
      %13 = vector.load %arg7[%c0_15, %c0_16, %c0_17] : memref<16x4x128xf32, #tpu.memory_space<vmem>>, vector<16x4x128xf32>
      %c0_18 = arith.constant 0 : index
      %c0_19 = arith.constant 0 : index
      %c0_20 = arith.constant 0 : index
      %14 = vector.load %arg6[%c0_18, %c0_19, %c0_20] : memref<16x4x128xf32, #tpu.memory_space<vmem>>, vector<16x4x128xf32>
      tpu.vector_store %arg6[%c0_18, %c0_19, %c0_20], %13 {strides = array<i32>} : memref<16x4x128xf32, #tpu.memory_space<vmem>>, vector<16x4x128xf32>,
    } else {
    }
    return
  }
  func.func @transform_0(%arg0: i32, %arg1: i32, %arg2: i32, %arg3: i32) -> (i32, i32, i32) {
    %c0_i32 = arith.constant 0 : i32
    return %arg0, %arg1, %arg3 : i32, i32, i32
  }
  func.func @transform_1(%arg0: i32, %arg1: i32, %arg2: i32, %arg3: i32) -> (i32, i32, i32, i32) {
    %0 = arith.subi %arg2, %arg3 : i32
    %c1_i32 = arith.constant 1 : i32
    %1 = arith.addi %0, %c1_i32 : i32
    %c1_i32_0 = arith.constant 1 : i32
    %2 = arith.subi %1, %c1_i32_0 : i32
    %c0_i32 = arith.constant 0 : i32
    %c0_i32_1 = arith.constant 0 : i32
    %c0_i32_2 = arith.constant 0 : i32
    return %2, %arg0, %c0_i32, %c0_i32_1 : i32, i32, i32, i32
  }
  func.func @transform_2(%arg0: i32, %arg1: i32, %arg2: i32, %arg3: i32) -> (i32, i32, i32) {
    %c0_i32 = arith.constant 0 : i32
    return %arg0, %arg1, %arg2 : i32, i32, i32
  }
}

</mosaic_0001>

<bundles_post_ra>
// kernel: tpu_custom_call.1
= control target key start
LH: loop header
LB: loop body
LE: loop exit
PB: predicated region body
PF: predicated region fallthrough
CT: control target
= control target key end

     0   :  { %7 = vsyncpa [#allocation4], 0  ;;  %s906_s0 = inlined_call_operand.hbm [shape: f32[16,4,128], index: 0, kind: input, shape index: {}]   ;;  %s907_s1 = inlined_call_operand.hbm [shape: f32[1,16,128,128], index: 1, kind: input, shape index: {}]   ;;  %s908_s2 = inlined_call_operand.hbm [shape: f32[16,4,128], index: 2, kind: output, shape index: {}]  }
   0x1   :  { %8 = vsyncpa [#allocation7], 0 }
   0x2   :  { %9 = vsyncpa [#allocation5], 0  ;;  %s14_s11 = sshll.u32 %s906_s0, 4  ;;  %s852_s12 = smov [#allocation3]   ;;  %s15_s11 = int_to_ptr.hbm [resolvable:$true] %s14_s11 }
   0x3   :  { %s16_s13 = sshll.u32 %s852_s12, 4  ;;  %s31_s16 = sshll.u32 %s907_s1, 4  ;;  %s17_s13 = int_to_ptr.vmem [resolvable:$true] %s16_s13  ;;  %s32_s16 = int_to_ptr.hbm [resolvable:$true] %s31_s16 }
   0x4   :  { %s853_s17 = smov 64   ;;  %s854_s18 = smov 4  }
   0x5   :  { %22 = dma.hbm_to_vmem [thread:$0]  %s15_s11, 1024, %s17_s13, [#allocation4], %s853_s17, %s853_s17, %s854_s18  }
   0x6   :  { %s855_s19 = smov [#allocation6]   ;;  %s856_s21 = smov 128  }
   0x7   :  { %s33_s20 = sshll.u32 %s855_s19, 4  ;;  %s857_s0 = smov 8   ;;  %s34_s20 = int_to_ptr.vmem [resolvable:$true] %s33_s20 }
   0x8   :  { %39 = dma.hbm_to_vmem [thread:$0]  %s32_s16, 32768, %s34_s20, [#allocation7], %s856_s21, %s856_s21, %s857_s0  }
   0x9   :  { %846 = dma.done.wait [#allocation4], 1024  }
   0xa   :  { %847 = vsyncadd [#allocation4], 4294966272 }
   0xb   :  { %848 = dma.done.wait [#allocation7], 32768  }
   0xc   :  { %849 = vsyncadd [#allocation7], 4294934528  ;;  %v132_v0 = vld [vmem:[#allocation6 + $0x178] sm:$0xff]  ;;  %v131_v2 = vld [vmem:[#allocation6 + $0x170] sm:$0xff]  ;;  %s859_s1 = smov [#allocation8]   ;;  %s750_s25 = sshll.u32 %s908_s2, 4  ;;  %s751_s25 = int_to_ptr.hbm [resolvable:$true] %s750_s25 }
   0xd   :  { %v148_v1 = vld [vmem:[#allocation6 + $0x1f8] sm:$0xff]  ;;  %397 = vmatpush.msra.mxu2 %v132_v0  ;;  %v147_v3 = vld [vmem:[#allocation6 + $0x1f0] sm:$0xff]  ;;  %v130_v4 = vld [vmem:[#allocation6 + $0x168] sm:$0xff]  ;;  %s748_s22 = sshll.u32 %s859_s1, 4  ;;  %s749_s22 = int_to_ptr.vmem [resolvable:$true] %s748_s22 }
   0xe   :  { %417 = vmatpush.msra.mxu3 %v148_v1  ;;  %v146_v5 = vld [vmem:[#allocation6 + $0x1e8] sm:$0xff]  ;;  %v100_v6 = vld [vmem:[#allocation6 + $0x78] sm:$0xff]  ;;  %v99_v8 = vld [vmem:[#allocation6 + $0x70] sm:$0xff] }
   0xf   :  { %v116_v7 = vld [vmem:[#allocation6 + $0xf8] sm:$0xff]  ;;  %398 = vmatpush.msra.mxu2 %v131_v2  ;;  %v115_v9 = vld [vmem:[#allocation6 + $0xf0] sm:$0xff]  ;;  %357 = vmatpush.msra.mxu0 %v100_v6  ;;  %v129_v10 = vld [vmem:[#allocation6 + $0x160] sm:$0xff] }
  0x10   :  { %418 = vmatpush.msra.mxu3 %v147_v3  ;;  %377 = vmatpush.msra.mxu1 %v116_v7  ;;  %v145_v11 = vld [vmem:[#allocation6 + $0x1e0] sm:$0xff]  ;;  %v98_v12 = vld [vmem:[#allocation6 + $0x68] sm:$0xff]  ;;  %v128_v14 = vld [vmem:[#allocation6 + $0x158] sm:$0xff] }
  0x11   :  { %399 = vmatpush.msra.mxu2 %v130_v4  ;;  %v114_v13 = vld [vmem:[#allocation6 + $0xe8] sm:$0xff]  ;;  %358 = vmatpush.msra.mxu0 %v99_v8  ;;  %v144_v15 = vld [vmem:[#allocation6 + $0x1d8] sm:$0xff]  ;;  %v97_v16 = vld [vmem:[#allocation6 + $0x60] sm:$0xff] }
  0x12   :  { %419 = vmatpush.msra.mxu3 %v146_v5  ;;  %378 = vmatpush.msra.mxu1 %v115_v9  ;;  %v113_v17 = vld [vmem:[#allocation6 + $0xe0] sm:$0xff]  ;;  %v127_v18 = vld [vmem:[#allocation6 + $0x150] sm:$0xff]  ;;  %v96_v20 = vld [vmem:[#allocation6 + $0x58] sm:$0xff] }
  0x13   :  { %400 = vmatpush.msra.mxu2 %v129_v10  ;;  %359 = vmatpush.msra.mxu0 %v98_v12  ;;  %v143_v19 = vld [vmem:[#allocation6 + $0x1d0] sm:$0xff]  ;;  %v112_v21 = vld [vmem:[#allocation6 + $0xd8] sm:$0xff]  ;;  %v126_v22 = vld [vmem:[#allocation6 + $0x148] sm:$0xff] }
  0x14   :  { %420 = vmatpush.msra.mxu3 %v145_v11  ;;  %379 = vmatpush.msra.mxu1 %v114_v13  ;;  %v142_v23 = vld [vmem:[#allocation6 + $0x1c8] sm:$0xff]  ;;  %v95_v24 = vld [vmem:[#allocation6 + $0x50] sm:$0xff]  ;;  %v125_v26 = vld [vmem:[#allocation6 + $0x140] sm:$0xff] }
  0x15   :  { %401 = vmatpush.msra.mxu2 %v128_v14  ;;  %360 = vmatpush.msra.mxu0 %v97_v16  ;;  %v111_v25 = vld [vmem:[#allocation6 + $0xd0] sm:$0xff]  ;;  %v141_v27 = vld [vmem:[#allocation6 + $0x1c0] sm:$0xff]  ;;  %v94_v28 = vld [vmem:[#allocation6 + $0x48] sm:$0xff] }
  0x16   :  { %421 = vmatpush.msra.mxu3 %v144_v15  ;;  %380 = vmatpush.msra.mxu1 %v113_v17  ;;  %v110_v29 = vld [vmem:[#allocation6 + $0xc8] sm:$0xff]  ;;  %v124_v30 = vld [vmem:[#allocation6 + $0x138] sm:$0xff]  ;;  %v93_v32 = vld [vmem:[#allocation6 + $0x40] sm:$0xff] }
  0x17   :  { %402 = vmatpush.msra.mxu2 %v127_v18  ;;  %361 = vmatpush.msra.mxu0 %v96_v20  ;;  %v140_v31 = vld [vmem:[#allocation6 + $0x1b8] sm:$0xff]  ;;  %v109_v33 = vld [vmem:[#allocation6 + $0xc0] sm:$0xff]  ;;  %v123_v34 = vld [vmem:[#allocation6 + $0x130] sm:$0xff] }
  0x18   :  { %422 = vmatpush.msra.mxu3 %v143_v19  ;;  %381 = vmatpush.msra.mxu1 %v112_v21  ;;  %v139_v35 = vld [vmem:[#allocation6 + $0x1b0] sm:$0xff]  ;;  %v92_v36 = vld [vmem:[#allocation6 + $0x38] sm:$0xff]  ;;  %v122_v38 = vld [vmem:[#allocation6 + $0x128] sm:$0xff] }
  0x19   :  { %403 = vmatpush.msra.mxu2 %v126_v22  ;;  %362 = vmatpush.msra.mxu0 %v95_v24  ;;  %v108_v37 = vld [vmem:[#allocation6 + $0xb8] sm:$0xff]  ;;  %v138_v39 = vld [vmem:[#allocation6 + $0x1a8] sm:$0xff]  ;;  %v91_v40 = vld [vmem:[#allocation6 + $0x30] sm:$0xff] }
  0x1a   :  { %423 = vmatpush.msra.mxu3 %v142_v23  ;;  %382 = vmatpush.msra.mxu1 %v111_v25  ;;  %v107_v41 = vld [vmem:[#allocation6 + $0xb0] sm:$0xff]  ;;  %v121_v42 = vld [vmem:[#allocation6 + $0x120] sm:$0xff]  ;;  %v90_v44 = vld [vmem:[#allocation6 + $0x28] sm:$0xff] }
  0x1b   :  { %404 = vmatpush.msra.mxu2 %v125_v26  ;;  %363 = vmatpush.msra.mxu0 %v94_v28  ;;  %v137_v43 = vld [vmem:[#allocation6 + $0x1a0] sm:$0xff]  ;;  %v106_v45 = vld [vmem:[#allocation6 + $0xa8] sm:$0xff]  ;;  %v120_v46 = vld [vmem:[#allocation6 + $0x118] sm:$0xff] }
  0x1c   :  { %424 = vmatpush.msra.mxu3 %v141_v27  ;;  %383 = vmatpush.msra.mxu1 %v110_v29  ;;  %v136_v47 = vld [vmem:[#allocation6 + $0x198] sm:$0xff]  ;;  %v89_v48 = vld [vmem:[#allocation6 + $0x20] sm:$0xff]  ;;  %v119_v50 = vld [vmem:[#allocation6 + $0x110] sm:$0xff] }
  0x1d   :  { %405 = vmatpush.msra.mxu2 %v124_v30  ;;  %364 = vmatpush.msra.mxu0 %v93_v32  ;;  %v105_v49 = vld [vmem:[#allocation6 + $0xa0] sm:$0xff]  ;;  %v135_v51 = vld [vmem:[#allocation6 + $0x190] sm:$0xff]  ;;  %v88_v52 = vld [vmem:[#allocation6 + $0x18] sm:$0xff] }
  0x1e   :  { %425 = vmatpush.msra.mxu3 %v140_v31  ;;  %384 = vmatpush.msra.mxu1 %v109_v33  ;;  %v104_v53 = vld [vmem:[#allocation6 + $0x98] sm:$0xff]  ;;  %v118_v54 = vld [vmem:[#allocation6 + $0x108] sm:$0xff]  ;;  %v87_v56 = vld [vmem:[#allocation6 + $0x10] sm:$0xff] }
  0x1f   :  { %406 = vmatpush.msra.mxu2 %v123_v34  ;;  %365 = vmatpush.msra.mxu0 %v92_v36  ;;  %v134_v55 = vld [vmem:[#allocation6 + $0x188] sm:$0xff]  ;;  %v103_v57 = vld [vmem:[#allocation6 + $0x90] sm:$0xff]  ;;  %v117_v58 = vld [vmem:[#allocation6 + $0x100] sm:$0xff] }
  0x20   :  { %426 = vmatpush.msra.mxu3 %v139_v35  ;;  %385 = vmatpush.msra.mxu1 %v108_v37  ;;  %v133_v59 = vld [vmem:[#allocation6 + $0x180] sm:$0xff]  ;;  %v196_v60 = vld [vmem:[#allocation6 + $0x378] sm:$0xff]  ;;  %v86_v62 = vld [vmem:[#allocation6 + $0x8] sm:$0xff] }
  0x21   :  { %407 = vmatpush.msra.mxu2 %v122_v38  ;;  %366 = vmatpush.msra.mxu0 %v91_v40  ;;  %v212_v61 = vld [vmem:[#allocation6 + $0x3f8] sm:$0xff]  ;;  %v102_v63 = vld [vmem:[#allocation6 + $0x88] sm:$0xff]  ;;  %v195_v0 = vld [vmem:[#allocation6 + $0x370] sm:$0xff] }
  0x22   :  { %427 = vmatpush.msra.mxu3 %v138_v39  ;;  %386 = vmatpush.msra.mxu1 %v107_v41  ;;  %v211_v1 = vld [vmem:[#allocation6 + $0x3f0] sm:$0xff]  ;;  %v85_v2 = vld [vmem:[#allocation6] sm:$0xff]  ;;  %v194_v4 = vld [vmem:[#allocation6 + $0x368] sm:$0xff] }
  0x23   :  { %408 = vmatpush.msra.mxu2 %v121_v42  ;;  %367 = vmatpush.msra.mxu0 %v90_v44  ;;  %v101_v3 = vld [vmem:[#allocation6 + $0x80] sm:$0xff]  ;;  %v210_v5 = vld [vmem:[#allocation6 + $0x3e8] sm:$0xff]  ;;  %v164_v6 = vld [vmem:[#allocation6 + $0x278] sm:$0xff] }
  0x24   :  { %428 = vmatpush.msra.mxu3 %v137_v43  ;;  %387 = vmatpush.msra.mxu1 %v106_v45  ;;  %v180_v7 = vld [vmem:[#allocation6 + $0x2f8] sm:$0xff]  ;;  %v193_v8 = vld [vmem:[#allocation6 + $0x360] sm:$0xff]  ;;  %v163_v10 = vld [vmem:[#allocation6 + $0x270] sm:$0xff] }
  0x25   :  { %409 = vmatpush.msra.mxu2 %v120_v46  ;;  %368 = vmatpush.msra.mxu0 %v89_v48  ;;  %v209_v9 = vld [vmem:[#allocation6 + $0x3e0] sm:$0xff]  ;;  %v179_v11 = vld [vmem:[#allocation6 + $0x2f0] sm:$0xff]  ;;  %v192_v12 = vld [vmem:[#allocation6 + $0x358] sm:$0xff] }
  0x26   :  { %429 = vmatpush.msra.mxu3 %v136_v47  ;;  %388 = vmatpush.msra.mxu1 %v105_v49  ;;  %v208_v13 = vld [vmem:[#allocation6 + $0x3d8] sm:$0xff]  ;;  %v162_v14 = vld [vmem:[#allocation6 + $0x268] sm:$0xff]  ;;  %v191_v16 = vld [vmem:[#allocation6 + $0x350] sm:$0xff] }
  0x27   :  { %410 = vmatpush.msra.mxu2 %v119_v50  ;;  %369 = vmatpush.msra.mxu0 %v88_v52  ;;  %v178_v15 = vld [vmem:[#allocation6 + $0x2e8] sm:$0xff]  ;;  %v207_v17 = vld [vmem:[#allocation6 + $0x3d0] sm:$0xff]  ;;  %v161_v18 = vld [vmem:[#allocation6 + $0x260] sm:$0xff] }
  0x28   :  { %430 = vmatpush.msra.mxu3 %v135_v51  ;;  %389 = vmatpush.msra.mxu1 %v104_v53  ;;  %v177_v19 = vld [vmem:[#allocation6 + $0x2e0] sm:$0xff]  ;;  %v190_v20 = vld [vmem:[#allocation6 + $0x348] sm:$0xff]  ;;  %v160_v22 = vld [vmem:[#allocation6 + $0x258] sm:$0xff] }
  0x29   :  { %411 = vmatpush.msra.mxu2 %v118_v54  ;;  %370 = vmatpush.msra.mxu0 %v87_v56  ;;  %v206_v21 = vld [vmem:[#allocation6 + $0x3c8] sm:$0xff]  ;;  %v176_v23 = vld [vmem:[#allocation6 + $0x2d8] sm:$0xff]  ;;  %v189_v24 = vld [vmem:[#allocation6 + $0x340] sm:$0xff] }
  0x2a   :  { %431 = vmatpush.msra.mxu3 %v134_v55  ;;  %390 = vmatpush.msra.mxu1 %v103_v57  ;;  %v205_v25 = vld [vmem:[#allocation6 + $0x3c0] sm:$0xff]  ;;  %v159_v26 = vld [vmem:[#allocation6 + $0x250] sm:$0xff]  ;;  %v188_v28 = vld [vmem:[#allocation6 + $0x338] sm:$0xff] }
  0x2b   :  { %412 = vmatpush.msra.mxu2 %v117_v58  ;;  %371 = vmatpush.msra.mxu0 %v86_v62  ;;  %v175_v27 = vld [vmem:[#allocation6 + $0x2d0] sm:$0xff]  ;;  %v204_v29 = vld [vmem:[#allocation6 + $0x3b8] sm:$0xff]  ;;  %v158_v30 = vld [vmem:[#allocation6 + $0x248] sm:$0xff] }
  0x2c   :  { %432 = vmatpush.msra.mxu3 %v133_v59  ;;  %391 = vmatpush.msra.mxu1 %v102_v63  ;;  %v174_v31 = vld [vmem:[#allocation6 + $0x2c8] sm:$0xff]  ;;  %v187_v32 = vld [vmem:[#allocation6 + $0x330] sm:$0xff]  ;;  %v157_v34 = vld [vmem:[#allocation6 + $0x240] sm:$0xff] }
  0x2d   :  { %477 = vmatpush.msrb.mxu2 %v196_v60  ;;  %372 = vmatpush.msra.mxu0 %v85_v2  ;;  %v203_v33 = vld [vmem:[#allocation6 + $0x3b0] sm:$0xff]  ;;  %v173_v35 = vld [vmem:[#allocation6 + $0x2c0] sm:$0xff]  ;;  %v186_v36 = vld [vmem:[#allocation6 + $0x328] sm:$0xff] }
  0x2e   :  { %497 = vmatpush.msrb.mxu3 %v212_v61  ;;  %392 = vmatpush.msra.mxu1 %v101_v3  ;;  %v202_v37 = vld [vmem:[#allocation6 + $0x3a8] sm:$0xff]  ;;  %v156_v38 = vld [vmem:[#allocation6 + $0x238] sm:$0xff]  ;;  %v185_v40 = vld [vmem:[#allocation6 + $0x320] sm:$0xff] }
  0x2f   :  { %478 = vmatpush.msrb.mxu2 %v195_v0  ;;  %437 = vmatpush.msrb.mxu0 %v164_v6  ;;  %v172_v39 = vld [vmem:[#allocation6 + $0x2b8] sm:$0xff]  ;;  %v201_v41 = vld [vmem:[#allocation6 + $0x3a0] sm:$0xff]  ;;  %v155_v42 = vld [vmem:[#allocation6 + $0x230] sm:$0xff] }
  0x30   :  { %498 = vmatpush.msrb.mxu3 %v211_v1  ;;  %457 = vmatpush.msrb.mxu1 %v180_v7  ;;  %v171_v43 = vld [vmem:[#allocation6 + $0x2b0] sm:$0xff]  ;;  %v184_v44 = vld [vmem:[#allocation6 + $0x318] sm:$0xff]  ;;  %v154_v46 = vld [vmem:[#allocation6 + $0x228] sm:$0xff] }
  0x31   :  { %479 = vmatpush.msrb.mxu2 %v194_v4  ;;  %438 = vmatpush.msrb.mxu0 %v163_v10  ;;  %v200_v45 = vld [vmem:[#allocation6 + $0x398] sm:$0xff]  ;;  %v170_v47 = vld [vmem:[#allocation6 + $0x2a8] sm:$0xff]  ;;  %v183_v48 = vld [vmem:[#allocation6 + $0x310] sm:$0xff] }
  0x32   :  { %499 = vmatpush.msrb.mxu3 %v210_v5  ;;  %458 = vmatpush.msrb.mxu1 %v179_v11  ;;  %v199_v49 = vld [vmem:[#allocation6 + $0x390] sm:$0xff]  ;;  %v153_v50 = vld [vmem:[#allocation6 + $0x220] sm:$0xff]  ;;  %v182_v52 = vld [vmem:[#allocation6 + $0x308] sm:$0xff] }
  0x33   :  { %480 = vmatpush.msrb.mxu2 %v193_v8  ;;  %439 = vmatpush.msrb.mxu0 %v162_v14  ;;  %v169_v51 = vld [vmem:[#allocation6 + $0x2a0] sm:$0xff]  ;;  %v198_v53 = vld [vmem:[#allocation6 + $0x388] sm:$0xff]  ;;  %v152_v54 = vld [vmem:[#allocation6 + $0x218] sm:$0xff] }
  0x34   :  { %500 = vmatpush.msrb.mxu3 %v209_v9  ;;  %459 = vmatpush.msrb.mxu1 %v178_v15  ;;  %v168_v55 = vld [vmem:[#allocation6 + $0x298] sm:$0xff]  ;;  %v181_v56 = vld [vmem:[#allocation6 + $0x300] sm:$0xff]  ;;  %v71_v58 = vld [vmem:[#allocation3 + $0x8] sm:$0xf] }
  0x35   :  { %481 = vmatpush.msrb.mxu2 %v192_v12  ;;  %440 = vmatpush.msrb.mxu0 %v161_v18  ;;  %v197_v57 = vld [vmem:[#allocation6 + $0x380] sm:$0xff]  ;;  %v72_v59 = vld [vmem:[#allocation3 + $0xc] sm:$0xf]  ;;  %v260_v60 = vld [vmem:[#allocation6 + $0x578] sm:$0xff] }
  0x36   :  { %501 = vmatpush.msrb.mxu3 %v208_v13  ;;  %460 = vmatpush.msrb.mxu1 %v177_v19  ;;  %v276_v61 = vld [vmem:[#allocation6 + $0x5f8] sm:$0xff]  ;;  %v151_v62 = vld [vmem:[#allocation6 + $0x210] sm:$0xff]  ;;  %v150_v2 = vld [vmem:[#allocation6 + $0x208] sm:$0xff] }
  0x37   :  { %482 = vmatpush.msrb.mxu2 %v191_v16  ;;  %441 = vmatpush.msrb.mxu0 %v160_v22  ;;  %v167_v63 = vld [vmem:[#allocation6 + $0x290] sm:$0xff]  ;;  %v166_v3 = vld [vmem:[#allocation6 + $0x288] sm:$0xff]  ;;  %v149_v6 = vld [vmem:[#allocation6 + $0x200] sm:$0xff] }
  0x38   :  { %502 = vmatpush.msrb.mxu3 %v207_v17  ;;  %461 = vmatpush.msrb.mxu1 %v176_v23  ;;  %v259_v0 = vld [vmem:[#allocation6 + $0x570] sm:$0xff]  ;;  %v258_v4 = vld [vmem:[#allocation6 + $0x568] sm:$0xff]  ;;  %v165_v7 = vld [vmem:[#allocation6 + $0x280] sm:$0xff] }
  0x39   :  { %483 = vmatpush.msrb.mxu2 %v190_v20  ;;  %442 = vmatpush.msrb.mxu0 %v159_v26  ;;  %v275_v1 = vld [vmem:[#allocation6 + $0x5f0] sm:$0xff]  ;;  %v274_v5 = vld [vmem:[#allocation6 + $0x5e8] sm:$0xff]  ;;  %v69_v8 = vld [vmem:[#allocation3] sm:$0xf] }
  0x3a   :  { %503 = vmatpush.msrb.mxu3 %v206_v21  ;;  %462 = vmatpush.msrb.mxu1 %v175_v27  ;;  %v70_v9 = vld [vmem:[#allocation3 + $0x4] sm:$0xf]  ;;  %v228_v10 = vld [vmem:[#allocation6 + $0x478] sm:$0xff]  ;;  %v227_v14 = vld [vmem:[#allocation6 + $0x470] sm:$0xff] }
  0x3b   :  { %484 = vmatpush.msrb.mxu2 %v189_v24  ;;  %443 = vmatpush.msrb.mxu0 %v158_v30  ;;  %v244_v11 = vld [vmem:[#allocation6 + $0x4f8] sm:$0xff]  ;;  %v257_v12 = vld [vmem:[#allocation6 + $0x560] sm:$0xff]  ;;  %v243_v15 = vld [vmem:[#allocation6 + $0x4f0] sm:$0xff] }
  0x3c   :  { %504 = vmatpush.msrb.mxu3 %v205_v25  ;;  %463 = vmatpush.msrb.mxu1 %v174_v31  ;;  %v273_v13 = vld [vmem:[#allocation6 + $0x5e0] sm:$0xff]  ;;  %v256_v16 = vld [vmem:[#allocation6 + $0x558] sm:$0xff]  ;;  %v226_v18 = vld [vmem:[#allocation6 + $0x468] sm:$0xff] }
  0x3d   :  { %485 = vmatpush.msrb.mxu2 %v188_v28  ;;  %444 = vmatpush.msrb.mxu0 %v157_v34  ;;  %v272_v17 = vld [vmem:[#allocation6 + $0x5d8] sm:$0xff]  ;;  %v242_v19 = vld [vmem:[#allocation6 + $0x4e8] sm:$0xff]  ;;  %v255_v20 = vld [vmem:[#allocation6 + $0x550] sm:$0xff] }
  0x3e   :  { %505 = vmatpush.msrb.mxu3 %v204_v29  ;;  %464 = vmatpush.msrb.mxu1 %v173_v35  ;;  %v271_v21 = vld [vmem:[#allocation6 + $0x5d0] sm:$0xff]  ;;  %v225_v22 = vld [vmem:[#allocation6 + $0x460] sm:$0xff]  ;;  %v254_v24 = vld [vmem:[#allocation6 + $0x548] sm:$0xff] }
  0x3f   :  { %486 = vmatpush.msrb.mxu2 %v187_v32  ;;  %445 = vmatpush.msrb.mxu0 %v156_v38  ;;  %v241_v23 = vld [vmem:[#allocation6 + $0x4e0] sm:$0xff]  ;;  %v270_v25 = vld [vmem:[#allocation6 + $0x5c8] sm:$0xff]  ;;  %v224_v26 = vld [vmem:[#allocation6 + $0x458] sm:$0xff] }
  0x40   :  { %506 = vmatpush.msrb.mxu3 %v203_v33  ;;  %465 = vmatpush.msrb.mxu1 %v172_v39  ;;  %v240_v27 = vld [vmem:[#allocation6 + $0x4d8] sm:$0xff]  ;;  %v253_v28 = vld [vmem:[#allocation6 + $0x540] sm:$0xff]  ;;  %v223_v30 = vld [vmem:[#allocation6 + $0x450] sm:$0xff] }
  0x41   :  { %487 = vmatpush.msrb.mxu2 %v186_v36  ;;  %446 = vmatpush.msrb.mxu0 %v155_v42  ;;  %v269_v29 = vld [vmem:[#allocation6 + $0x5c0] sm:$0xff]  ;;  %v239_v31 = vld [vmem:[#allocation6 + $0x4d0] sm:$0xff]  ;;  %v252_v32 = vld [vmem:[#allocation6 + $0x538] sm:$0xff] }
  0x42   :  { %507 = vmatpush.msrb.mxu3 %v202_v37  ;;  %466 = vmatpush.msrb.mxu1 %v171_v43  ;;  %v268_v33 = vld [vmem:[#allocation6 + $0x5b8] sm:$0xff]  ;;  %v222_v34 = vld [vmem:[#allocation6 + $0x448] sm:$0xff]  ;;  %v251_v36 = vld [vmem:[#allocation6 + $0x530] sm:$0xff] }
  0x43   :  { %488 = vmatpush.msrb.mxu2 %v185_v40  ;;  %447 = vmatpush.msrb.mxu0 %v154_v46  ;;  %v238_v35 = vld [vmem:[#allocation6 + $0x4c8] sm:$0xff]  ;;  %v267_v37 = vld [vmem:[#allocation6 + $0x5b0] sm:$0xff]  ;;  %v221_v38 = vld [vmem:[#allocation6 + $0x440] sm:$0xff] }
  0x44   :  { %508 = vmatpush.msrb.mxu3 %v201_v41  ;;  %467 = vmatpush.msrb.mxu1 %v170_v47  ;;  %v237_v39 = vld [vmem:[#allocation6 + $0x4c0] sm:$0xff]  ;;  %v250_v40 = vld [vmem:[#allocation6 + $0x528] sm:$0xff]  ;;  %v220_v42 = vld [vmem:[#allocation6 + $0x438] sm:$0xff] }
  0x45   :  { %489 = vmatpush.msrb.mxu2 %v184_v44  ;;  %448 = vmatpush.msrb.mxu0 %v153_v50  ;;  %v266_v41 = vld [vmem:[#allocation6 + $0x5a8] sm:$0xff]  ;;  %v236_v43 = vld [vmem:[#allocation6 + $0x4b8] sm:$0xff]  ;;  %v249_v44 = vld [vmem:[#allocation6 + $0x520] sm:$0xff] }
  0x46   :  { %509 = vmatpush.msrb.mxu3 %v200_v45  ;;  %468 = vmatpush.msrb.mxu1 %v169_v51  ;;  %v265_v45 = vld [vmem:[#allocation6 + $0x5a0] sm:$0xff]  ;;  %v219_v46 = vld [vmem:[#allocation6 + $0x430] sm:$0xff]  ;;  %v218_v50 = vld [vmem:[#allocation6 + $0x428] sm:$0xff] }
  0x47   :  { %490 = vmatpush.msrb.mxu2 %v183_v48  ;;  %449 = vmatpush.msrb.mxu0 %v152_v54  ;;  %v235_v47 = vld [vmem:[#allocation6 + $0x4b0] sm:$0xff]  ;;  %v248_v48 = vld [vmem:[#allocation6 + $0x518] sm:$0xff]  ;;  %v234_v51 = vld [vmem:[#allocation6 + $0x4a8] sm:$0xff] }
  0x48   :  { %510 = vmatpush.msrb.mxu3 %v199_v49  ;;  %469 = vmatpush.msrb.mxu1 %v168_v55  ;;  %v264_v49 = vld [vmem:[#allocation6 + $0x598] sm:$0xff]  ;;  %v217_v54 = vld [vmem:[#allocation6 + $0x420] sm:$0xff] }
  0x49   :  { %491 = vmatpush.msrb.mxu2 %v182_v52  ;;  %433 = vmatmul.f32.vlgmr.msra.gmra.mxu3 %v72_v59  ;;  %v247_v52 = vld [vmem:[#allocation6 + $0x510] sm:$0xff]  ;;  %v233_v55 = vld [vmem:[#allocation6 + $0x4a0] sm:$0xff]  ;;  %v232_v59 = vld [vmem:[#allocation6 + $0x498] sm:$0xff] }
  0x4a   :  { %511 = vmatpush.msrb.mxu3 %v198_v53  ;;  %413 = vmatmul.f32.vlgmr.msra.gmra.mxu2 %v71_v58  ;;  %v263_v53 = vld [vmem:[#allocation6 + $0x590] sm:$0xff]  ;;  %v216_v58 = vld [vmem:[#allocation6 + $0x418] sm:$0xff] }
  0x4b   :  { %492 = vmatpush.msrb.mxu2 %v181_v56  ;;  %450 = vmatpush.msrb.mxu0 %v151_v62  ;;  %v246_v56 = vld [vmem:[#allocation6 + $0x508] sm:$0xff]  ;;  %v75_v62 = vld [vmem:[#allocation3 + $0x18] sm:$0xf] }
  0x4c   :  { %512 = vmatpush.msrb.mxu3 %v197_v57  ;;  %470 = vmatpush.msrb.mxu1 %v167_v63  ;;  %v262_v57 = vld [vmem:[#allocation6 + $0x588] sm:$0xff]  ;;  %v76_v63 = vld [vmem:[#allocation3 + $0x1c] sm:$0xf] }
  0x4d   :  { %557 = vmatpush.msra.mxu2 %v260_v60  ;;  %451 = vmatpush.msrb.mxu0 %v150_v2  ;;  %v245_v60 = vld [vmem:[#allocation6 + $0x500] sm:$0xff]  ;;  %v215_v2 = vld [vmem:[#allocation6 + $0x410] sm:$0xff] }
  0x4e   :  { %577 = vmatpush.msra.mxu3 %v276_v61  ;;  %471 = vmatpush.msrb.mxu1 %v166_v3  ;;  %v261_v61 = vld [vmem:[#allocation6 + $0x580] sm:$0xff]  ;;  %v231_v3 = vld [vmem:[#allocation6 + $0x490] sm:$0xff] }
  0x4f   :  { %558 = vmatpush.msra.mxu2 %v259_v0  ;;  %452 = vmatpush.msrb.mxu0 %v149_v6  ;;  %v324_v0 = vld [vmem:[#allocation6 + $0x778] sm:$0xff]  ;;  %v214_v6 = vld [vmem:[#allocation6 + $0x408] sm:$0xff] }
  0x50   :  { %578 = vmatpush.msra.mxu3 %v275_v1  ;;  %472 = vmatpush.msrb.mxu1 %v165_v7  ;;  %v340_v1 = vld [vmem:[#allocation6 + $0x7f8] sm:$0xff]  ;;  %v230_v7 = vld [vmem:[#allocation6 + $0x488] sm:$0xff] }
  0x51   :  { %559 = vmatpush.msra.mxu2 %v258_v4  ;;  %373 = vmatmul.f32.vlgmr.msra.gmra.mxu0 %v69_v8  ;;  %v323_v4 = vld [vmem:[#allocation6 + $0x770] sm:$0xff]  ;;  %v322_v8 = vld [vmem:[#allocation6 + $0x768] sm:$0xff] }
  0x52   :  { %579 = vmatpush.msra.mxu3 %v274_v5  ;;  %393 = vmatmul.f32.vlgmr.msra.gmra.mxu1 %v70_v9  ;;  %v339_v5 = vld [vmem:[#allocation6 + $0x7f0] sm:$0xff]  ;;  %v338_v9 = vld [vmem:[#allocation6 + $0x7e8] sm:$0xff] }
  0x53   :  { %517 = vmatpush.msra.mxu0 %v228_v10  ;;  %537 = vmatpush.msra.mxu1 %v244_v11  ;;  %v213_v10 = vld [vmem:[#allocation6 + $0x400] sm:$0xff] }
  0x54   :  { %560 = vmatpush.msra.mxu2 %v257_v12  ;;  %580 = vmatpush.msra.mxu3 %v273_v13  ;;  %v229_v11 = vld [vmem:[#allocation6 + $0x480] sm:$0xff]  ;;  %v73_v12 = vld [vmem:[#allocation3 + $0x10] sm:$0xf]  ;;  %v74_v13 = vld [vmem:[#allocation3 + $0x14] sm:$0xf] }
  0x55   :  { %518 = vmatpush.msra.mxu0 %v227_v14  ;;  %538 = vmatpush.msra.mxu1 %v243_v15  ;;  %v292_v14 = vld [vmem:[#allocation6 + $0x678] sm:$0xff] }
  0x56   :  { %561 = vmatpush.msra.mxu2 %v256_v16  ;;  %581 = vmatpush.msra.mxu3 %v272_v17  ;;  %v308_v15 = vld [vmem:[#allocation6 + $0x6f8] sm:$0xff]  ;;  %v321_v16 = vld [vmem:[#allocation6 + $0x760] sm:$0xff] }
  0x57   :  { %519 = vmatpush.msra.mxu0 %v226_v18  ;;  %539 = vmatpush.msra.mxu1 %v242_v19  ;;  %v337_v17 = vld [vmem:[#allocation6 + $0x7e0] sm:$0xff]  ;;  %v291_v18 = vld [vmem:[#allocation6 + $0x670] sm:$0xff] }
  0x58   :  { %562 = vmatpush.msra.mxu2 %v255_v20  ;;  %582 = vmatpush.msra.mxu3 %v271_v21  ;;  %v307_v19 = vld [vmem:[#allocation6 + $0x6f0] sm:$0xff]  ;;  %v320_v20 = vld [vmem:[#allocation6 + $0x758] sm:$0xff] }
  0x59   :  { %520 = vmatpush.msra.mxu0 %v225_v22  ;;  %540 = vmatpush.msra.mxu1 %v241_v23  ;;  %v336_v21 = vld [vmem:[#allocation6 + $0x7d8] sm:$0xff]  ;;  %v290_v22 = vld [vmem:[#allocation6 + $0x668] sm:$0xff] }
  0x5a   :  { %563 = vmatpush.msra.mxu2 %v254_v24  ;;  %583 = vmatpush.msra.mxu3 %v270_v25  ;;  %v306_v23 = vld [vmem:[#allocation6 + $0x6e8] sm:$0xff]  ;;  %v319_v24 = vld [vmem:[#allocation6 + $0x750] sm:$0xff] }
  0x5b   :  { %521 = vmatpush.msra.mxu0 %v224_v26  ;;  %541 = vmatpush.msra.mxu1 %v240_v27  ;;  %v335_v25 = vld [vmem:[#allocation6 + $0x7d0] sm:$0xff]  ;;  %v289_v26 = vld [vmem:[#allocation6 + $0x660] sm:$0xff] }
  0x5c   :  { %564 = vmatpush.msra.mxu2 %v253_v28  ;;  %584 = vmatpush.msra.mxu3 %v269_v29  ;;  %v305_v27 = vld [vmem:[#allocation6 + $0x6e0] sm:$0xff]  ;;  %v858_v28 = vmov 0.0   ;;  %v318_v29 = vld [vmem:[#allocation6 + $0x748] sm:$0xff] }
  0x5d   :  { %522 = vmatpush.msra.mxu0 %v223_v30  ;;  %542 = vmatpush.msra.mxu1 %v239_v31  ;;  %53 = vst [vmem:[#allocation2] sm:$0xf] %v858_v28  ;;  %v334_v30 = vld [vmem:[#allocation6 + $0x7c8] sm:$0xff]  ;;  %v288_v31 = vld [vmem:[#allocation6 + $0x658] sm:$0xff] }
  0x5e   :  { %565 = vmatpush.msra.mxu2 %v252_v32  ;;  %585 = vmatpush.msra.mxu3 %v268_v33  ;;  %54 = vst [vmem:[#allocation2 + $0x4] sm:$0xf] %v858_v28  ;;  %v304_v32 = vld [vmem:[#allocation6 + $0x6d8] sm:$0xff]  ;;  %v317_v33 = vld [vmem:[#allocation6 + $0x740] sm:$0xff] }
  0x5f   :  { %523 = vmatpush.msra.mxu0 %v222_v34  ;;  %543 = vmatpush.msra.mxu1 %v238_v35  ;;  %55 = vst [vmem:[#allocation2 + $0x8] sm:$0xf] %v858_v28  ;;  %v333_v34 = vld [vmem:[#allocation6 + $0x7c0] sm:$0xff]  ;;  %v287_v35 = vld [vmem:[#allocation6 + $0x650] sm:$0xff] }
  0x60   :  { %566 = vmatpush.msra.mxu2 %v251_v36  ;;  %586 = vmatpush.msra.mxu3 %v267_v37  ;;  %56 = vst [vmem:[#allocation2 + $0xc] sm:$0xf] %v858_v28  ;;  %v303_v36 = vld [vmem:[#allocation6 + $0x6d0] sm:$0xff]  ;;  %v316_v37 = vld [vmem:[#allocation6 + $0x738] sm:$0xff] }
  0x61   :  { %524 = vmatpush.msra.mxu0 %v221_v38  ;;  %544 = vmatpush.msra.mxu1 %v237_v39  ;;  %57 = vst [vmem:[#allocation2 + $0x10] sm:$0xf] %v858_v28  ;;  %v332_v38 = vld [vmem:[#allocation6 + $0x7b8] sm:$0xff]  ;;  %v286_v39 = vld [vmem:[#allocation6 + $0x648] sm:$0xff] }
  0x62   :  { %567 = vmatpush.msra.mxu2 %v250_v40  ;;  %587 = vmatpush.msra.mxu3 %v266_v41  ;;  %58 = vst [vmem:[#allocation2 + $0x14] sm:$0xf] %v858_v28  ;;  %v302_v40 = vld [vmem:[#allocation6 + $0x6c8] sm:$0xff]  ;;  %v315_v41 = vld [vmem:[#allocation6 + $0x730] sm:$0xff] }
  0x63   :  { %525 = vmatpush.msra.mxu0 %v220_v42  ;;  %545 = vmatpush.msra.mxu1 %v236_v43  ;;  %59 = vst [vmem:[#allocation2 + $0x18] sm:$0xf] %v858_v28  ;;  %v331_v42 = vld [vmem:[#allocation6 + $0x7b0] sm:$0xff]  ;;  %v285_v43 = vld [vmem:[#allocation6 + $0x640] sm:$0xff] }
  0x64   :  { %568 = vmatpush.msra.mxu2 %v249_v44  ;;  %588 = vmatpush.msra.mxu3 %v265_v45  ;;  %60 = vst [vmem:[#allocation2 + $0x1c] sm:$0xf] %v858_v28  ;;  %v301_v44 = vld [vmem:[#allocation6 + $0x6c0] sm:$0xff]  ;;  %v314_v45 = vld [vmem:[#allocation6 + $0x728] sm:$0xff] }
  0x65   :  { %526 = vmatpush.msra.mxu0 %v219_v46  ;;  %546 = vmatpush.msra.mxu1 %v235_v47  ;;  %61 = vst [vmem:[#allocation2 + $0x20] sm:$0xf] %v858_v28  ;;  %v330_v46 = vld [vmem:[#allocation6 + $0x7a8] sm:$0xff]  ;;  %v284_v47 = vld [vmem:[#allocation6 + $0x638] sm:$0xff] }
  0x66   :  { %569 = vmatpush.msra.mxu2 %v248_v48  ;;  %589 = vmatpush.msra.mxu3 %v264_v49  ;;  %62 = vst [vmem:[#allocation2 + $0x24] sm:$0xf] %v858_v28  ;;  %v300_v48 = vld [vmem:[#allocation6 + $0x6b8] sm:$0xff]  ;;  %v313_v49 = vld [vmem:[#allocation6 + $0x720] sm:$0xff] }
  0x67   :  { %527 = vmatpush.msra.mxu0 %v218_v50  ;;  %547 = vmatpush.msra.mxu1 %v234_v51  ;;  %63 = vst [vmem:[#allocation2 + $0x28] sm:$0xf] %v858_v28  ;;  %v329_v50 = vld [vmem:[#allocation6 + $0x7a0] sm:$0xff]  ;;  %v79_v51 = vld [vmem:[#allocation3 + $0x28] sm:$0xf] }
  0x68   :  { %570 = vmatpush.msra.mxu2 %v247_v52  ;;  %590 = vmatpush.msra.mxu3 %v263_v53  ;;  %64 = vst [vmem:[#allocation2 + $0x2c] sm:$0xf] %v858_v28  ;;  %v80_v52 = vld [vmem:[#allocation3 + $0x2c] sm:$0xf]  ;;  %v283_v53 = vld [vmem:[#allocation6 + $0x630] sm:$0xff] }
  0x69   :  { %528 = vmatpush.msra.mxu0 %v217_v54  ;;  %548 = vmatpush.msra.mxu1 %v233_v55  ;;  %65 = vst [vmem:[#allocation2 + $0x30] sm:$0xf] %v858_v28  ;;  %v299_v54 = vld [vmem:[#allocation6 + $0x6b0] sm:$0xff]  ;;  %v312_v55 = vld [vmem:[#allocation6 + $0x718] sm:$0xff] }
  0x6a   :  { %571 = vmatpush.msra.mxu2 %v246_v56  ;;  %591 = vmatpush.msra.mxu3 %v262_v57  ;;  %66 = vst [vmem:[#allocation2 + $0x34] sm:$0xf] %v858_v28  ;;  %v328_v56 = vld [vmem:[#allocation6 + $0x798] sm:$0xff]  ;;  %v282_v57 = vld [vmem:[#allocation6 + $0x628] sm:$0xff] }
  0x6b   :  { %529 = vmatpush.msra.mxu0 %v216_v58  ;;  %549 = vmatpush.msra.mxu1 %v232_v59  ;;  %67 = vst [vmem:[#allocation2 + $0x38] sm:$0xf] %v858_v28  ;;  %v298_v58 = vld [vmem:[#allocation6 + $0x6a8] sm:$0xff]  ;;  %v311_v59 = vld [vmem:[#allocation6 + $0x710] sm:$0xff] }
  0x6c   :  { %572 = vmatpush.msra.mxu2 %v245_v60  ;;  %592 = vmatpush.msra.mxu3 %v261_v61  ;;  %68 = vst [vmem:[#allocation2 + $0x3c] sm:$0xf] %v858_v28  ;;  %v327_v60 = vld [vmem:[#allocation6 + $0x790] sm:$0xff]  ;;  %v281_v61 = vld [vmem:[#allocation6 + $0x620] sm:$0xff] }
  0x6d   :  { %493 = vmatmul.f32.vlgmr.msrb.gmra.mxu2 %v75_v62  ;;  %513 = vmatmul.f32.vlgmr.msrb.gmra.mxu3 %v76_v63  ;;  %v297_v62 = vld [vmem:[#allocation6 + $0x6a0] sm:$0xff]  ;;  %v310_v63 = vld [vmem:[#allocation6 + $0x708] sm:$0xff] }
  0x6e   :  { %637 = vmatpush.msrb.mxu2 %v324_v0  ;;  %657 = vmatpush.msrb.mxu3 %v340_v1  ;;  %v326_v0 = vld [vmem:[#allocation6 + $0x788] sm:$0xff]  ;;  %v77_v1 = vld [vmem:[#allocation3 + $0x20] sm:$0xf] }
  0x6f   :  { %530 = vmatpush.msra.mxu0 %v215_v2  ;;  %550 = vmatpush.msra.mxu1 %v231_v3  ;;  %v78_v2 = vld [vmem:[#allocation3 + $0x24] sm:$0xf]  ;;  %v280_v3 = vld [vmem:[#allocation6 + $0x618] sm:$0xff] }
  0x70   :  { %638 = vmatpush.msrb.mxu2 %v323_v4  ;;  %658 = vmatpush.msrb.mxu3 %v339_v5  ;;  %v296_v4 = vld [vmem:[#allocation6 + $0x698] sm:$0xff]  ;;  %v309_v5 = vld [vmem:[#allocation6 + $0x700] sm:$0xff] }
  0x71   :  { %531 = vmatpush.msra.mxu0 %v214_v6  ;;  %551 = vmatpush.msra.mxu1 %v230_v7  ;;  %v325_v6 = vld [vmem:[#allocation6 + $0x780] sm:$0xff]  ;;  %v83_v7 = vld [vmem:[#allocation3 + $0x38] sm:$0xf] }
  0x72   :  { %639 = vmatpush.msrb.mxu2 %v322_v8  ;;  %659 = vmatpush.msrb.mxu3 %v338_v9  ;;  %v84_v8 = vld [vmem:[#allocation3 + $0x3c] sm:$0xf]  ;;  %v279_v9 = vld [vmem:[#allocation6 + $0x610] sm:$0xff] }
  0x73   :  { %532 = vmatpush.msra.mxu0 %v213_v10  ;;  %552 = vmatpush.msra.mxu1 %v229_v11  ;;  %v295_v10 = vld [vmem:[#allocation6 + $0x690] sm:$0xff]  ;;  %v278_v11 = vld [vmem:[#allocation6 + $0x608] sm:$0xff] }
  0x74   :  { %453 = vmatmul.f32.vlgmr.msrb.gmra.mxu0 %v73_v12  ;;  %473 = vmatmul.f32.vlgmr.msrb.gmra.mxu1 %v74_v13  ;;  %v294_v12 = vld [vmem:[#allocation6 + $0x688] sm:$0xff]  ;;  %v277_v13 = vld [vmem:[#allocation6 + $0x600] sm:$0xff] }
  0x75   :  { %597 = vmatpush.msrb.mxu0 %v292_v14  ;;  %617 = vmatpush.msrb.mxu1 %v308_v15  ;;  %v293_v14 = vld [vmem:[#allocation6 + $0x680] sm:$0xff]  ;;  %v81_v15 = vld [vmem:[#allocation3 + $0x30] sm:$0xf] }
  0x76   :  { %640 = vmatpush.msrb.mxu2 %v321_v16  ;;  %660 = vmatpush.msrb.mxu3 %v337_v17  ;;  %v82_v16 = vld [vmem:[#allocation3 + $0x34] sm:$0xf]  ;;  %v343_v17 = vld [vmem:[#allocation2 + $0x8] sm:$0xf] }
  0x77   :  { %598 = vmatpush.msrb.mxu0 %v291_v18  ;;  %618 = vmatpush.msrb.mxu1 %v307_v19  ;;  %v341_v18 = vld [vmem:[#allocation2] sm:$0xf]  ;;  %v342_v19 = vld [vmem:[#allocation2 + $0x4] sm:$0xf] }
  0x78   :  { %641 = vmatpush.msrb.mxu2 %v320_v20  ;;  %661 = vmatpush.msrb.mxu3 %v336_v21  ;;  %v344_v20 = vld [vmem:[#allocation2 + $0xc] sm:$0xf] }
  0x79   :  { %599 = vmatpush.msrb.mxu0 %v290_v22  ;;  %619 = vmatpush.msrb.mxu1 %v306_v23 }
  0x7a   :  { %642 = vmatpush.msrb.mxu2 %v319_v24  ;;  %662 = vmatpush.msrb.mxu3 %v335_v25 }
  0x7b   :  { %600 = vmatpush.msrb.mxu0 %v289_v26  ;;  %620 = vmatpush.msrb.mxu1 %v305_v27 }
  0x7c   :  { %643 = vmatpush.msrb.mxu2 %v318_v29  ;;  %663 = vmatpush.msrb.mxu3 %v334_v30 }
  0x7d   :  { %601 = vmatpush.msrb.mxu0 %v288_v31  ;;  %621 = vmatpush.msrb.mxu1 %v304_v32 }
  0x7e   :  { %644 = vmatpush.msrb.mxu2 %v317_v33  ;;  %664 = vmatpush.msrb.mxu3 %v333_v34  ;;  %v347_v33 = vld [vmem:[#allocation2 + $0x18] sm:$0xf]  ;;  %v345_v34 = vld [vmem:[#allocation2 + $0x10] sm:$0xf] }
  0x7f   :  { %602 = vmatpush.msrb.mxu0 %v287_v35  ;;  %622 = vmatpush.msrb.mxu1 %v303_v36  ;;  %v346_v35 = vld [vmem:[#allocation2 + $0x14] sm:$0xf]  ;;  %v348_v36 = vld [vmem:[#allocation2 + $0x1c] sm:$0xf] }
  0x80   :  { %645 = vmatpush.msrb.mxu2 %v316_v37  ;;  %665 = vmatpush.msrb.mxu3 %v332_v38 }
  0x81   :  { %603 = vmatpush.msrb.mxu0 %v286_v39  ;;  %623 = vmatpush.msrb.mxu1 %v302_v40 }
  0x82   :  { %646 = vmatpush.msrb.mxu2 %v315_v41  ;;  %666 = vmatpush.msrb.mxu3 %v331_v42 }
  0x83   :  { %604 = vmatpush.msrb.mxu0 %v285_v43  ;;  %624 = vmatpush.msrb.mxu1 %v301_v44 }
  0x84   :  { %647 = vmatpush.msrb.mxu2 %v314_v45  ;;  %667 = vmatpush.msrb.mxu3 %v330_v46 }
  0x85   :  { %605 = vmatpush.msrb.mxu0 %v284_v47  ;;  %625 = vmatpush.msrb.mxu1 %v300_v48 }
  0x86   :  { %648 = vmatpush.msrb.mxu2 %v313_v49  ;;  %668 = vmatpush.msrb.mxu3 %v329_v50  ;;  %v351_v49 = vld [vmem:[#allocation2 + $0x28] sm:$0xf]  ;;  %v349_v50 = vld [vmem:[#allocation2 + $0x20] sm:$0xf] }
  0x87   :  { %573 = vmatmul.f32.vlgmr.msra.gmra.mxu2 %v79_v51  ;;  %593 = vmatmul.f32.vlgmr.msra.gmra.mxu3 %v80_v52  ;;  %v350_v51 = vld [vmem:[#allocation2 + $0x24] sm:$0xf]  ;;  %v352_v52 = vld [vmem:[#allocation2 + $0x2c] sm:$0xf] }
  0x88   :  { %606 = vmatpush.msrb.mxu0 %v283_v53  ;;  %626 = vmatpush.msrb.mxu1 %v299_v54 }
  0x89   :  { %649 = vmatpush.msrb.mxu2 %v312_v55  ;;  %669 = vmatpush.msrb.mxu3 %v328_v56 }
  0x8a   :  { %607 = vmatpush.msrb.mxu0 %v282_v57  ;;  %627 = vmatpush.msrb.mxu1 %v298_v58 }
  0x8b   :  { %650 = vmatpush.msrb.mxu2 %v311_v59  ;;  %670 = vmatpush.msrb.mxu3 %v327_v60 }
  0x8c   :  { %608 = vmatpush.msrb.mxu0 %v281_v61  ;;  %628 = vmatpush.msrb.mxu1 %v297_v62  ;;  %v353_v61 = vld [vmem:[#allocation2 + $0x30] sm:$0xf]  ;;  %v354_v62 = vld [vmem:[#allocation2 + $0x34] sm:$0xf] }
  0x8d   :  { %651 = vmatpush.msrb.mxu2 %v310_v63  ;;  %671 = vmatpush.msrb.mxu3 %v326_v0 }
  0x8e   :  { %533 = vmatmul.f32.vlgmr.msra.gmra.mxu0 %v77_v1  ;;  %553 = vmatmul.f32.vlgmr.msra.gmra.mxu1 %v78_v2  ;;  %v355_v2 = vld [vmem:[#allocation2 + $0x38] sm:$0xf] }
  0x8f   :  { %609 = vmatpush.msrb.mxu0 %v280_v3  ;;  %629 = vmatpush.msrb.mxu1 %v296_v4 }
  0x90   :  { %652 = vmatpush.msrb.mxu2 %v309_v5  ;;  %672 = vmatpush.msrb.mxu3 %v325_v6  ;;  %v356_v6 = vld [vmem:[#allocation2 + $0x3c] sm:$0xf] }
  0x91   :  { %653 = vmatmul.f32.vlgmr.msrb.gmra.mxu2 %v83_v7  ;;  %673 = vmatmul.f32.vlgmr.msrb.gmra.mxu3 %v84_v8 }
  0x92   :  { %610 = vmatpush.msrb.mxu0 %v279_v9  ;;  %630 = vmatpush.msrb.mxu1 %v295_v10 }
  0x94   :  { %611 = vmatpush.msrb.mxu0 %v278_v11  ;;  %631 = vmatpush.msrb.mxu1 %v294_v12 }
  0x96   :  { %612 = vmatpush.msrb.mxu0 %v277_v13  ;;  %632 = vmatpush.msrb.mxu1 %v293_v14 }
  0x97   :  { %613 = vmatmul.f32.vlgmr.msrb.gmra.mxu0 %v81_v15  ;;  %633 = vmatmul.f32.vlgmr.msrb.gmra.mxu1 %v82_v16 }
  0xcc   :  { %v434_v22 = vpop.f32.mrf.mxu3 }
  0xcd   :  { %v414_v21 = vpop.f32.mrf.mxu2  ;;  %v680_v28 = vadd.f32 %v434_v22, %v344_v20 }
  0xce   :  { %v374_v23 = vpop.f32.mrf.mxu0  ;;  %v679_v25 = vadd.f32 %v414_v21, %v343_v17 }
  0xcf   :  { %v394_v24 = vpop.f32.mrf.mxu1  ;;  %v677_v26 = vadd.f32 %v374_v23, %v341_v18  ;;  %696 = vst [vmem:[#allocation2 + $0xc] sm:$0xf] %v680_v28 }
  0xd0   :  { %v678_v27 = vadd.f32 %v394_v24, %v342_v19  ;;  %695 = vst [vmem:[#allocation2 + $0x8] sm:$0xf] %v679_v25 }
  0xd1   :  { %693 = vst [vmem:[#allocation2] sm:$0xf] %v677_v26 }
  0xd2   :  { %694 = vst [vmem:[#allocation2 + $0x4] sm:$0xf] %v678_v27 }
  0xd6   :  { %v715_v32 = vld [vmem:[#allocation2 + $0xc] sm:$0xf] }
  0xd7   :  { %v714_v29 = vld [vmem:[#allocation2 + $0x8] sm:$0xf]  ;;  %731 = vst [vmem:[#allocation8 + $0xc] sm:$0xf] %v715_v32 }
  0xd8   :  { %v712_v30 = vld [vmem:[#allocation2] sm:$0xf]  ;;  %730 = vst [vmem:[#allocation8 + $0x8] sm:$0xf] %v714_v29 }
  0xd9   :  { %728 = vst [vmem:[#allocation8] sm:$0xf] %v712_v30  ;;  %v713_v31 = vld [vmem:[#allocation2 + $0x4] sm:$0xf] }
  0xda   :  { %729 = vst [vmem:[#allocation8 + $0x4] sm:$0xf] %v713_v31 }
  0xf0   :  { %v494_v37 = vpop.f32.mrf.mxu2  ;;  %v514_v38 = vpop.f32.mrf.mxu3 }
  0xf1   :  { %v454_v39 = vpop.f32.mrf.mxu0  ;;  %v474_v40 = vpop.f32.mrf.mxu1  ;;  %v683_v41 = vadd.f32 %v494_v37, %v347_v33  ;;  %v684_v44 = vadd.f32 %v514_v38, %v348_v36 }
  0xf2   :  { %v681_v42 = vadd.f32 %v454_v39, %v345_v34  ;;  %v682_v43 = vadd.f32 %v474_v40, %v346_v35 }
  0xf3   :  { %699 = vst [vmem:[#allocation2 + $0x18] sm:$0xf] %v683_v41 }
  0xf4   :  { %697 = vst [vmem:[#allocation2 + $0x10] sm:$0xf] %v681_v42 }
  0xf5   :  { %698 = vst [vmem:[#allocation2 + $0x14] sm:$0xf] %v682_v43 }
  0xf6   :  { %700 = vst [vmem:[#allocation2 + $0x1c] sm:$0xf] %v684_v44 }
  0xfa   :  { %v718_v45 = vld [vmem:[#allocation2 + $0x18] sm:$0xf] }
  0xfb   :  { %v716_v46 = vld [vmem:[#allocation2 + $0x10] sm:$0xf]  ;;  %734 = vst [vmem:[#allocation8 + $0x18] sm:$0xf] %v718_v45 }
  0xfc   :  { %732 = vst [vmem:[#allocation8 + $0x10] sm:$0xf] %v716_v46  ;;  %v717_v47 = vld [vmem:[#allocation2 + $0x14] sm:$0xf] }
  0xfd   :  { %733 = vst [vmem:[#allocation8 + $0x14] sm:$0xf] %v717_v47  ;;  %v719_v48 = vld [vmem:[#allocation2 + $0x1c] sm:$0xf] }
  0xfe   :  { %735 = vst [vmem:[#allocation8 + $0x1c] sm:$0xf] %v719_v48 }
 0x10a   :  { %v574_v53 = vpop.f32.mrf.mxu2  ;;  %v594_v54 = vpop.f32.mrf.mxu3 }
 0x10b   :  { %v534_v55 = vpop.f32.mrf.mxu0  ;;  %v554_v56 = vpop.f32.mrf.mxu1  ;;  %v687_v57 = vadd.f32 %v574_v53, %v351_v49  ;;  %v688_v60 = vadd.f32 %v594_v54, %v352_v52 }
 0x10c   :  { %v685_v58 = vadd.f32 %v534_v55, %v349_v50  ;;  %v686_v59 = vadd.f32 %v554_v56, %v350_v51 }
 0x10d   :  { %703 = vst [vmem:[#allocation2 + $0x28] sm:$0xf] %v687_v57 }
 0x10e   :  { %701 = vst [vmem:[#allocation2 + $0x20] sm:$0xf] %v685_v58 }
 0x10f   :  { %702 = vst [vmem:[#allocation2 + $0x24] sm:$0xf] %v686_v59 }
 0x110   :  { %704 = vst [vmem:[#allocation2 + $0x2c] sm:$0xf] %v688_v60 }
 0x114   :  { %v722_v63 = vld [vmem:[#allocation2 + $0x28] sm:$0xf]  ;;  %v614_v0 = vpop.f32.mrf.mxu0  ;;  %v634_v1 = vpop.f32.mrf.mxu1 }
 0x115   :  { %v720_v3 = vld [vmem:[#allocation2 + $0x20] sm:$0xf]  ;;  %738 = vst [vmem:[#allocation8 + $0x28] sm:$0xf] %v722_v63  ;;  %v689_v4 = vadd.f32 %v614_v0, %v353_v61  ;;  %v654_v5 = vpop.f32.mrf.mxu2  ;;  %v674_v7 = vpop.f32.mrf.mxu3  ;;  %v690_v9 = vadd.f32 %v634_v1, %v354_v62 }
 0x116   :  { %736 = vst [vmem:[#allocation8 + $0x20] sm:$0xf] %v720_v3  ;;  %v721_v8 = vld [vmem:[#allocation2 + $0x24] sm:$0xf]  ;;  %v691_v11 = vadd.f32 %v654_v5, %v355_v2  ;;  %v692_v12 = vadd.f32 %v674_v7, %v356_v6 }
 0x117   :  { %737 = vst [vmem:[#allocation8 + $0x24] sm:$0xf] %v721_v8  ;;  %v723_v10 = vld [vmem:[#allocation2 + $0x2c] sm:$0xf] }
 0x118   :  { %739 = vst [vmem:[#allocation8 + $0x2c] sm:$0xf] %v723_v10 }
 0x119   :  { %705 = vst [vmem:[#allocation2 + $0x30] sm:$0xf] %v689_v4 }
 0x11a   :  { %706 = vst [vmem:[#allocation2 + $0x34] sm:$0xf] %v690_v9 }
 0x11b   :  { %707 = vst [vmem:[#allocation2 + $0x38] sm:$0xf] %v691_v11 }
 0x11c   :  { %708 = vst [vmem:[#allocation2 + $0x3c] sm:$0xf] %v692_v12 }
 0x120   :  { %v724_v13 = vld [vmem:[#allocation2 + $0x30] sm:$0xf] }
 0x121   :  { %740 = vst [vmem:[#allocation8 + $0x30] sm:$0xf] %v724_v13  ;;  %v725_v14 = vld [vmem:[#allocation2 + $0x34] sm:$0xf] }
 0x122   :  { %741 = vst [vmem:[#allocation8 + $0x34] sm:$0xf] %v725_v14  ;;  %v726_v15 = vld [vmem:[#allocation2 + $0x38] sm:$0xf] }
 0x123   :  { %742 = vst [vmem:[#allocation8 + $0x38] sm:$0xf] %v726_v15  ;;  %v727_v16 = vld [vmem:[#allocation2 + $0x3c] sm:$0xf] }
 0x124   :  { %743 = vst [vmem:[#allocation8 + $0x3c] sm:$0xf] %v727_v16 }
 0x125   :  { %756 = dma.vmem_to_hbm [thread:$0]  %s749_s22, 1024, %s751_s25, [#allocation5], %s853_s17, %s853_s17, %s854_s18  }
 0x126   :  { %850 = dma.done.wait [#allocation5], 1024  }
 0x127   :  { %851 = vsyncadd [#allocation5], 4294966272 }
 0x128   :  { %761 = vsyncpa [#allocation4], 1 }
 0x129   :  { %762 = vsyncpa [#allocation7], 1 }
 0x12a   :  { %763 = vsyncpa [#allocation5], 1 }

</bundles_post_ra>
